<compile_context>
chip_gen: v6e
topology: v6e:2x2x1
jax: 0.10.0
libtpu: 0.0.40
codegen_flags: <defaults>
</compile_context>

<pallas_src>
import jax
import jax.numpy as jnp
from jax.experimental import pallas as pl
from jax.experimental.pallas import tpu as pltpu

LANE = 128  # hidden dim is zero-padded to this so every store is lane-dense

# ---- per-chip tuning (review: derive VMEM limit / tile per generation) -------
try:
    _VMEM_CAP = int(pltpu.get_tpu_info().vmem_capacity_bytes)
except Exception:  # pragma: no cover - conservative fallback
    _VMEM_CAP = 64 * 1024 * 1024
VMEM_LIMIT = max(32 * 1024 * 1024, min(int(0.8 * _VMEM_CAP), 110 * 1024 * 1024))
ROW_TILE = 256 if _VMEM_CAP >= 100 * 1024 * 1024 else 128


def _round_up(n, m):
    return ((n + m - 1) // m) * m


def _cp(semantics):
    return pltpu.CompilerParams(dimension_semantics=semantics,
                                vmem_limit_bytes=VMEM_LIMIT)


# ---------------------------------------------------------------------------
# Kernels / pallas_call wrappers
# ---------------------------------------------------------------------------

def project_in(x, mask, w, b, tile):
    """h = ReLU(x @ W_in + b_in) * node_mask   (f32 and bf16 copies emitted)."""
    v_pad, f_in = x.shape
    h_pad = w.shape[1]
    grid = (v_pad // tile,)

    def kernel(x_ref, m_ref, w_ref, b_ref, of_ref, ob_ref):
        y = jnp.dot(x_ref[...], w_ref[...],
                    preferred_element_type=jnp.float32) + b_ref[...]
        y = jnp.maximum(y, 0.0) * m_ref[...]
        of_ref[...] = y
        ob_ref[...] = y.astype(jnp.bfloat16)

    return pl.pallas_call(
        kernel,
        out_shape=(jax.ShapeDtypeStruct((v_pad, h_pad), jnp.float32),
                   jax.ShapeDtypeStruct((v_pad, h_pad), jnp.bfloat16)),
        grid=grid,
        in_specs=[pl.BlockSpec((tile, f_in), lambda i: (i, 0)),
                  pl.BlockSpec((tile, 1), lambda i: (i, 0)),
                  pl.BlockSpec((f_in, h_pad), lambda i: (0, 0)),
                  pl.BlockSpec((1, h_pad), lambda i: (0, 0))],
        out_specs=(pl.BlockSpec((tile, h_pad), lambda i: (i, 0)),
                   pl.BlockSpec((tile, h_pad), lambda i: (i, 0))),
        compiler_params=_cp(("parallel",)),
    )(x, mask, w, b)


def wln_layer(src_col, dst_row, efeat, h_f32, h_bf16, node_mask, p, tile):
    """One fused WLN conv layer (edge-message phase + node-update phase).

    Edge phase (per 128/256-edge tile):
        gather src_h via on-the-fly one-hot (bf16 MXU), msg = ReLU(Linear([src_h, e])),
        store msg (bf16) into a VMEM scratch.
    Node phase (per node tile):
        agg = on-the-fly scatter one-hot @ msg (bf16 MXU, f32 acc),
        h'  = ReLU(Linear([h, agg])) * node_mask,  emitted as f32 + bf16.
    """
    e_pad, f_e = efeat.shape
    v_pad, h_pad = h_f32.shape
    n_e = e_pad // tile
    n_v = v_pad // tile
    grid = (n_e + n_v,)

    def kernel(src_ref, dst_ref, ef_ref, hbf_ref, hf_ref, msk_ref,
               wmh_ref, wme_ref, bm_ref, wnh_ref, wna_ref, bn_ref,
               outf_ref, outb_ref, msg_ref):
        i = pl.program_id(0)

        @pl.when(i < n_e)
        def _edge_phase():
            # one-hot gather of source-node features, built in-register
            gat = (jax.lax.broadcasted_iota(jnp.int32, (tile, v_pad), 1)
                   == src_ref[...]).astype(jnp.bfloat16)                 # (tile, V)
            src_h = jnp.dot(gat, hbf_ref[...],
                            preferred_element_type=jnp.float32)          # (tile, H)
            m = (jnp.dot(src_h, wmh_ref[...], preferred_element_type=jnp.float32)
                 + jnp.dot(ef_ref[...], wme_ref[...], preferred_element_type=jnp.float32)
                 + bm_ref[...])
            e0 = pl.multiple_of(i * tile, tile)
            msg_ref[pl.ds(e0, tile), :] = jnp.maximum(m, 0.0).astype(jnp.bfloat16)

        @pl.when(i >= n_e)
        def _node_phase():
            j = i - n_e
            r0 = pl.multiple_of(j * tile, tile)
            # one-hot scatter (incoming-edge sum), built in-register
            sct = ((jax.lax.broadcasted_iota(jnp.int32, (tile, e_pad), 0) + r0)
                   == dst_ref[...]).astype(jnp.bfloat16)                 # (tile, E)
            agg = jnp.dot(sct, msg_ref[...],
                          preferred_element_type=jnp.float32)            # (tile, H)
            new_h = (jnp.dot(hf_ref[...], wnh_ref[...], preferred_element_type=jnp.float32)
                     + jnp.dot(agg, wna_ref[...], preferred_element_type=jnp.float32)
                     + bn_ref[...])
            new_h = jnp.maximum(new_h, 0.0) * msk_ref[...]
            outf_ref[...] = new_h
            outb_ref[...] = new_h.astype(jnp.bfloat16)

    edge_map = lambda i: (jnp.minimum(i, n_e - 1), 0)
    node_map = lambda i: (jnp.maximum(i - n_e, 0), 0)
    const_map = lambda i: (0, 0)

    return pl.pallas_call(
        kernel,
        out_shape=(jax.ShapeDtypeStruct((v_pad, h_pad), jnp.float32),
                   jax.ShapeDtypeStruct((v_pad, h_pad), jnp.bfloat16)),
        grid=grid,
        in_specs=[pl.BlockSpec((tile, 1), edge_map),        # src indices (column)
                  pl.BlockSpec((1, e_pad), const_map),      # dst indices (row, resident)
                  pl.BlockSpec((tile, f_e), edge_map),      # edge features
                  pl.BlockSpec((v_pad, h_pad), const_map),  # h (bf16, VMEM resident)
                  pl.BlockSpec((tile, h_pad), node_map),    # h (f32, per node tile)
                  pl.BlockSpec((tile, 1), node_map),        # node mask
                  pl.BlockSpec((h_pad, h_pad), const_map),  # W_msg_h
                  pl.BlockSpec((f_e, h_pad), const_map),    # W_msg_e
                  pl.BlockSpec((1, h_pad), const_map),      # b_msg
                  pl.BlockSpec((h_pad, h_pad), const_map),  # W_new_h
                  pl.BlockSpec((h_pad, h_pad), const_map),  # W_new_a
                  pl.BlockSpec((1, h_pad), const_map)],     # b_new
        out_specs=(pl.BlockSpec((tile, h_pad), node_map),
                   pl.BlockSpec((tile, h_pad), node_map)),
        scratch_shapes=[pltpu.VMEM((e_pad, h_pad), jnp.bfloat16)],
        # node phase depends on edge phase through the msg scratch -> "arbitrary"
        compiler_params=_cp(("arbitrary",)),
    )(src_col, dst_row, efeat, h_bf16, h_f32, node_mask,
      p['w_msg_h'], p['w_msg_e'], p['b_msg'],
      p['w_new_h'], p['w_new_a'], p['b_new'])


def diff_feats(map_col, prod_h_f32, react_h_bf16, tile):
    """diff[p] = prod_h[p] - react_h[map[p]]  (gather via on-the-fly one-hot)."""
    v2_pad, h_pad = prod_h_f32.shape
    v1_pad = react_h_bf16.shape[0]
    grid = (v2_pad // tile,)

    def kernel(map_ref, ph_ref, rbf_ref, of_ref, ob_ref):
        sel = (jax.lax.broadcasted_iota(jnp.int32, (tile, v1_pad), 1)
               == map_ref[...]).astype(jnp.bfloat16)
        r = jnp.dot(sel, rbf_ref[...], preferred_element_type=jnp.float32)
        d = ph_ref[...] - r
        of_ref[...] = d
        ob_ref[...] = d.astype(jnp.bfloat16)

    return pl.pallas_call(
        kernel,
        out_shape=(jax.ShapeDtypeStruct((v2_pad, h_pad), jnp.float32),
                   jax.ShapeDtypeStruct((v2_pad, h_pad), jnp.bfloat16)),
        grid=grid,
        in_specs=[pl.BlockSpec((tile, 1), lambda i: (i, 0)),
                  pl.BlockSpec((tile, h_pad), lambda i: (i, 0)),
                  pl.BlockSpec((v1_pad, h_pad), lambda i: (0, 0))],
        out_specs=(pl.BlockSpec((tile, h_pad), lambda i: (i, 0)),
                   pl.BlockSpec((tile, h_pad), lambda i: (i, 0))),
        compiler_params=_cp(("parallel",)),
    )(map_col, prod_h_f32, react_h_bf16)


def readout_predict(gid_row, h_bf16, w1, b1, w2, b2, cand_scores_pad, tile):
    """SumPooling (gridded reduction over node tiles) + predict MLP + scores."""
    v2_pad, h_pad = h_bf16.shape
    b_pad = cand_scores_pad.shape[0]
    grid = (v2_pad // tile,)

    def kernel(gid_ref, hbf_ref, w1_ref, b1_ref, w2_ref, b2_ref, cs_ref,
               o_ref, acc_ref):
        i = pl.program_id(0)

        @pl.when(i == 0)
        def _():
            acc_ref[...] = jnp.zeros_like(acc_ref)

        pool = (jax.lax.broadcasted_iota(jnp.int32, (b_pad, tile), 0)
                == gid_ref[...]).astype(jnp.bfloat16)                    # (B, tile)
        acc_ref[...] += jnp.dot(pool, hbf_ref[...],
                                preferred_element_type=jnp.float32)

        @pl.when(i == pl.num_programs(0) - 1)
        def _():
            hid = jnp.maximum(
                jnp.dot(acc_ref[...], w1_ref[...],
                        preferred_element_type=jnp.float32) + b1_ref[...], 0.0)
            o_ref[...] = (jnp.dot(hid, w2_ref[...],
                                  preferred_element_type=jnp.float32)
                          + b2_ref[...] + cs_ref[...])

    return pl.pallas_call(
        kernel,
        out_shape=jax.ShapeDtypeStruct((b_pad, LANE), jnp.float32),
        grid=grid,
        in_specs=[pl.BlockSpec((1, tile), lambda i: (0, i)),
                  pl.BlockSpec((tile, h_pad), lambda i: (i, 0)),
                  pl.BlockSpec((h_pad, h_pad), lambda i: (0, 0)),
                  pl.BlockSpec((1, h_pad), lambda i: (0, 0)),
                  pl.BlockSpec((h_pad, LANE), lambda i: (0, 0)),
                  pl.BlockSpec((1, LANE), lambda i: (0, 0)),
                  pl.BlockSpec((b_pad, LANE), lambda i: (0, 0))],
        out_specs=pl.BlockSpec((b_pad, LANE), lambda i: (0, 0)),
        scratch_shapes=[pltpu.VMEM((b_pad, h_pad), jnp.float32)],
        compiler_params=_cp(("arbitrary",)),
    )(gid_row, h_bf16, w1, b1, w2, b2, cand_scores_pad)


# ---------------------------------------------------------------------------
# Parameter init (PyTorch nn.Linear default), zero-padded to lane-dense shapes
# ---------------------------------------------------------------------------

def _linear_params(key, fan_in, fan_out):
    kw, kb = jax.random.split(key)
    bound = 1.0 / float(fan_in) ** 0.5
    w = jax.random.uniform(kw, (fan_in, fan_out), jnp.float32, -bound, bound)
    b = jax.random.uniform(kb, (1, fan_out), jnp.float32, -bound, bound)
    return w, b


def _pad2(a, rows, cols):
    return jnp.zeros((rows, cols), a.dtype).at[:a.shape[0], :a.shape[1]].set(a)


def wln_conv_params(key, hidden, edge_in, hidden_pad, node_in=None, project_in_feats=False):
    k0, k1, k2 = jax.random.split(key, 3)
    p = {}
    if project_in_feats:
        w_in, b_in = _linear_params(k0, node_in, hidden)
        p['w_in'] = _pad2(w_in, node_in, hidden_pad)
        p['b_in'] = _pad2(b_in, 1, hidden_pad)
    wm, bm = _linear_params(k1, hidden + edge_in, hidden)     # Linear(h+e -> h), split
    p['w_msg_h'] = _pad2(wm[:hidden], hidden_pad, hidden_pad)
    p['w_msg_e'] = _pad2(wm[hidden:], edge_in, hidden_pad)
    p['b_msg'] = _pad2(bm, 1, hidden_pad)
    wn, bn = _linear_params(k2, 2 * hidden, hidden)           # Linear(2h -> h), split
    p['w_new_h'] = _pad2(wn[:hidden], hidden_pad, hidden_pad)
    p['w_new_a'] = _pad2(wn[hidden:], hidden_pad, hidden_pad)
    p['b_new'] = _pad2(bn, 1, hidden_pad)
    return p


def init_params(key, node_in, edge_in, hidden, hidden_pad, n_gnn_layers=3):
    keys = jax.random.split(key, n_gnn_layers + 3)
    gnn = [wln_conv_params(keys[i], hidden, edge_in, hidden_pad,
                           node_in=node_in, project_in_feats=(i == 0))
           for i in range(n_gnn_layers)]
    diff_gnn = [wln_conv_params(keys[n_gnn_layers], hidden, edge_in, hidden_pad)]
    w1, b1 = _linear_params(keys[n_gnn_layers + 1], hidden, hidden)
    w2, b2 = _linear_params(keys[n_gnn_layers + 2], hidden, 1)
    predict = {'w1': _pad2(w1, hidden_pad, hidden_pad),
               'b1': _pad2(b1, 1, hidden_pad),
               'w2': _pad2(w2, hidden_pad, LANE),  # score lives in lane 0
               'b2': _pad2(b2, 1, LANE)}
    return {'gnn': gnn, 'diff_gnn': diff_gnn, 'predict': predict}


# ---------------------------------------------------------------------------
# Model forward (index glue in JAX, compute in Pallas kernels)
# ---------------------------------------------------------------------------

def run_wln(layers, h_f32, h_bf16, efeat, src_col, dst_row, node_mask, tile):
    for p in layers:
        if 'w_in' in p:                 # project_in_feats (first gnn layer only)
            h_f32, h_bf16 = project_in(h_f32, node_mask, p['w_in'], p['b_in'], tile)
        h_f32, h_bf16 = wln_layer(src_col, dst_row, efeat, h_f32, h_bf16,
                                  node_mask, p, tile)
    return h_f32, h_bf16


def wln_reaction_ranking_forward(params,
                                 comb_node_feats, comb_mask, comb_edge_feats,
                                 comb_src, comb_dst, v1_pad,
                                 prod_edge_feats, prod_src, prod_dst, prod_mask,
                                 map_col, gid_row, cand_scores_pad,
                                 num_candidates, tile):
    # shared WLN encoder over the merged block-diagonal reactant+product graph
    comb_f, comb_b = run_wln(params['gnn'], comb_node_feats, None,
                             comb_edge_feats, comb_src, comb_dst, comb_mask, tile)
    react_b = comb_b[:v1_pad]           # (V1_pad, H) bf16 (gather operand)
    prod_f = comb_f[v1_pad:]            # (V2_pad, H) f32
    # difference features, then the 1-layer diff WLN on the product graphs
    diff_f, diff_b = diff_feats(map_col, prod_f, react_b, tile)
    diff_f, diff_b = run_wln(params['diff_gnn'], diff_f, diff_b,
                             prod_edge_feats, prod_src, prod_dst, prod_mask, tile)
    pp = params['predict']
    out = readout_predict(gid_row, diff_b, pp['w1'], pp['b1'],
                          pp['w2'], pp['b2'], cand_scores_pad, tile)  # (B_pad, 128)
    return out[:num_candidates, :1]


# ---------------------------------------------------------------------------
# Example graphs / inputs
# ---------------------------------------------------------------------------

def chain_edges(n, offset):
    src, dst = [], []
    for k in range(n - 1):
        src += [offset + k, offset + k + 1]
        dst += [offset + k + 1, offset + k]
    return src, dst


def padded_idx(idx_list, total, fill=-1):
    out = [fill] * total
    out[:len(idx_list)] = idx_list
    return out


if __name__ == "__main__":
    node_in, edge_in, hidden = 16, 8, 32
    hidden_pad = LANE
    react_num_nodes = [5, 6]                     # reactant_graph.batch_num_nodes
    batch_num_candidate_products = [2, 3]        # candidates per reaction

    # ---- reactant graph (batched) ----
    src_r, dst_r, off = [], [], 0
    for n in react_num_nodes:
        s, d = chain_edges(n, off)
        src_r += s; dst_r += d; off += n
    V1, E1 = off, len(src_r)

    # ---- candidate product graphs (batched) ----
    prod_num_nodes = []
    for i, nc in enumerate(batch_num_candidate_products):
        prod_num_nodes += [react_num_nodes[i]] * nc
    src_p, dst_p, node_gid, off = [], [], [], 0
    for gi, n in enumerate(prod_num_nodes):
        s, d = chain_edges(n, off)
        src_p += s; dst_p += d
        node_gid += [gi] * n
        off += n
    V2, E2, B = off, len(src_p), len(prod_num_nodes)

    # product node -> reactant node mapping (diff feature construction)
    react_offsets, acc = [], 0
    for n in react_num_nodes:
        react_offsets.append(acc); acc += n
    map_idx = []
    for i, nc in enumerate(batch_num_candidate_products):
        for _ in range(nc):
            map_idx += list(range(react_offsets[i], react_offsets[i] + react_num_nodes[i]))

    # ---- padded sizes ----
    tile = ROW_TILE
    V1p, V2p = _round_up(V1, tile), _round_up(V2, tile)
    E1p, E2p = _round_up(E1, tile), _round_up(E2, tile)
    Bp = _round_up(B, 8)
    Vc, Ec = V1p + V2p, E1p + E2p               # merged block-diagonal graph

    # ---- merged-graph index arrays (-1 pad; product node ids offset by V1p) ----
    comb_src = [-1] * Ec
    comb_dst = [-1] * Ec
    for k in range(E1):
        comb_src[k], comb_dst[k] = src_r[k], dst_r[k]
    for k in range(E2):
        comb_src[E1p + k] = V1p + src_p[k]
        comb_dst[E1p + k] = V1p + dst_p[k]

    comb_src_col = jnp.array(comb_src, jnp.int32).reshape(Ec, 1)
    comb_dst_row = jnp.array(comb_dst, jnp.int32).reshape(1, Ec)
    prod_src_col = jnp.array(padded_idx(src_p, E2p), jnp.int32).reshape(E2p, 1)
    prod_dst_row = jnp.array(padded_idx(dst_p, E2p), jnp.int32).reshape(1, E2p)
    map_col = jnp.array(padded_idx(map_idx, V2p), jnp.int32).reshape(V2p, 1)
    gid_row = jnp.array(padded_idx(node_gid, V2p), jnp.int32).reshape(1, V2p)

    comb_mask = (jnp.zeros((Vc, 1), jnp.float32)
                 .at[:V1].set(1.0).at[V1p:V1p + V2].set(1.0))
    prod_mask = jnp.zeros((V2p, 1), jnp.float32).at[:V2].set(1.0)

    # ---- features ----
    key = jax.random.PRNGKey(0)
    k_rn, k_re, k_pn, k_pe, k_cs, k_params = jax.random.split(key, 6)
    react_node_feats = jax.random.normal(k_rn, (V1, node_in), jnp.float32)
    react_edge_feats = jax.random.normal(k_re, (E1, edge_in), jnp.float32)
    prod_node_feats = jax.random.normal(k_pn, (V2, node_in), jnp.float32)
    prod_edge_feats = jax.random.normal(k_pe, (E2, edge_in), jnp.float32)
    candidate_scores = jax.random.normal(k_cs, (B, 1), jnp.float32)

    comb_node_feats = (jnp.zeros((Vc, node_in), jnp.float32)
                       .at[:V1].set(react_node_feats)
                       .at[V1p:V1p + V2].set(prod_node_feats))
    comb_edge_feats = (jnp.zeros((Ec, edge_in), jnp.float32)
                       .at[:E1].set(react_edge_feats)
                       .at[E1p:E1p + E2].set(prod_edge_feats))
    prod_edge_feats_pad = jnp.zeros((E2p, edge_in), jnp.float32).at[:E2].set(prod_edge_feats)
    cand_scores_pad = jnp.zeros((Bp, LANE), jnp.float32).at[:B, 0:1].set(candidate_scores)

    params = init_params(k_params, node_in, edge_in, hidden, hidden_pad, n_gnn_layers=3)

    scores = wln_reaction_ranking_forward(
        params,
        comb_node_feats, comb_mask, comb_edge_feats,
        comb_src_col, comb_dst_row, V1p,
        prod_edge_feats_pad, prod_src_col, prod_dst_row, prod_mask,
        map_col, gid_row, cand_scores_pad, B, tile)
    scores = jax.block_until_ready(scores)
    assert scores.shape == (B, 1) and scores.dtype == jnp.float32
    assert bool(jnp.all(jnp.isfinite(scores)))
    print("KERNEL_OK")
</pallas_src>

<mosaic_0001>
module attributes {stable_mosaic.version = 11 : i64} {
  func.func @kernel(%arg0: i32, %arg1: memref<128x16xf32, #tpu.memory_space<vmem>>, %arg2: memref<128x1xf32, #tpu.memory_space<vmem>>, %arg3: memref<16x128xf32, #tpu.memory_space<vmem>>, %arg4: memref<1x128xf32, #tpu.memory_space<vmem>>, %arg5: memref<128x128xf32, #tpu.memory_space<vmem>>, %arg6: memref<128x128xbf16, #tpu.memory_space<vmem>>) attributes {dimension_semantics = [#tpu.dimension_semantics<parallel>], iteration_bounds = array<i64: 2>, scalar_prefetch = 0 : i64, scratch_operands = 0 : i64, tpu.core_type = #tpu.core_type<tc>, window_params = [{transform_indices = @transform_0, window_bounds = array<i64: 128, 16>}, {transform_indices = @transform_1, window_bounds = array<i64: 128, 1>}, {pipeline_mode = #tpu.pipeline_mode<synchronous>, transform_indices = @transform_2, window_bounds = array<i64: 16, 128>}, {pipeline_mode = #tpu.pipeline_mode<synchronous>, transform_indices = @transform_3, window_bounds = array<i64: 1, 128>}, {transform_indices = @transform_4, window_bounds = array<i64: 128, 128>}, {transform_indices = @transform_5, window_bounds = array<i64: 128, 128>}]} {
    %c0 = arith.constant 0 : index
    %c0_0 = arith.constant 0 : index
    %0 = vector.load %arg1[%c0, %c0_0] : memref<128x16xf32, #tpu.memory_space<vmem>>, vector<128x16xf32>
    %c0_1 = arith.constant 0 : index
    %c0_2 = arith.constant 0 : index
    %1 = vector.load %arg3[%c0_1, %c0_2] : memref<16x128xf32, #tpu.memory_space<vmem>>, vector<16x128xf32>
    %cst = arith.constant dense<0.000000e+00> : vector<128x128xf32>
    %2 = tpu.matmul %0, %1, %cst {dimension_numbers = #tpu.dot_dimension_numbers<[1], [0], [0], [1], [0, 0, 1, 1], [], []>} : vector<128x16xf32>, vector<16x128xf32>, vector<128x128xf32> -> vector<128x128xf32>
    %c0_3 = arith.constant 0 : index
    %c0_4 = arith.constant 0 : index
    %3 = vector.load %arg4[%c0_3, %c0_4] : memref<1x128xf32, #tpu.memory_space<vmem>>, vector<1x128xf32>
    %4 = vector.broadcast %3 : vector<1x128xf32> to vector<128x128xf32>
    %5 = arith.addf %2, %4 : vector<128x128xf32>
    %cst_5 = arith.constant 0.000000e+00 : f32
    %6 = vector.broadcast %cst_5 : f32 to vector<128x128xf32>
    %7 = arith.maximumf %5, %6 : vector<128x128xf32>
    %c0_6 = arith.constant 0 : index
    %c0_7 = arith.constant 0 : index
    %8 = vector.load %arg2[%c0_6, %c0_7] : memref<128x1xf32, #tpu.memory_space<vmem>>, vector<128x1xf32>
    %9 = vector.broadcast %8 : vector<128x1xf32> to vector<128x128xf32>
    %10 = arith.mulf %7, %9 : vector<128x128xf32>
    %c0_8 = arith.constant 0 : index
    %c0_9 = arith.constant 0 : index
    %11 = vector.load %arg5[%c0_8, %c0_9] : memref<128x128xf32, #tpu.memory_space<vmem>>, vector<128x128xf32>
    tpu.vector_store %arg5[%c0_8, %c0_9], %10 {strides = array<i32>} : memref<128x128xf32, #tpu.memory_space<vmem>>, vector<128x128xf32>,
    %12 = arith.truncf %10 : vector<128x128xf32> to vector<128x128xbf16>
    %c0_10 = arith.constant 0 : index
    %c0_11 = arith.constant 0 : index
    %13 = vector.load %arg6[%c0_10, %c0_11] : memref<128x128xbf16, #tpu.memory_space<vmem>>, vector<128x128xbf16>
    tpu.vector_store %arg6[%c0_10, %c0_11], %12 {strides = array<i32>} : memref<128x128xbf16, #tpu.memory_space<vmem>>, vector<128x128xbf16>,
    return
  }
  func.func @transform_0(%arg0: i32) -> (i32, i32) {
    %c0_i32 = arith.constant 0 : i32
    %c0_i32_0 = arith.constant 0 : i32
    return %arg0, %c0_i32 : i32, i32
  }
  func.func @transform_1(%arg0: i32) -> (i32, i32) {
    %c0_i32 = arith.constant 0 : i32
    %c0_i32_0 = arith.constant 0 : i32
    return %arg0, %c0_i32 : i32, i32
  }
  func.func @transform_2(%arg0: i32) -> (i32, i32) {
    %c0_i32 = arith.constant 0 : i32
    %c0_i32_0 = arith.constant 0 : i32
    %c0_i32_1 = arith.constant 0 : i32
    return %c0_i32, %c0_i32_0 : i32, i32
  }
  func.func @transform_3(%arg0: i32) -> (i32, i32) {
    %c0_i32 = arith.constant 0 : i32
    %c0_i32_0 = arith.constant 0 : i32
    %c0_i32_1 = arith.constant 0 : i32
    return %c0_i32, %c0_i32_0 : i32, i32
  }
  func.func @transform_4(%arg0: i32) -> (i32, i32) {
    %c0_i32 = arith.constant 0 : i32
    %c0_i32_0 = arith.constant 0 : i32
    return %arg0, %c0_i32 : i32, i32
  }
  func.func @transform_5(%arg0: i32) -> (i32, i32) {
    %c0_i32 = arith.constant 0 : i32
    %c0_i32_0 = arith.constant 0 : i32
    return %arg0, %c0_i32 : i32, i32
  }
}

</mosaic_0001>

<bundles_post_ra>
// kernel: tpu_custom_call.1
= control target key start
LH: loop header
LB: loop body
LE: loop exit
PB: predicated region body
PF: predicated region fallthrough
CT: control target
= control target key end

     0   :  { %11 = vsyncpa [#allocation3], 0  ;;  %s1455_s0 = inlined_call_operand.vmem [shape: f32[256,16], index: 0, kind: input, shape index: {}]   ;;  %s1456_s1 = inlined_call_operand.vmem [shape: f32[256,1], index: 1, kind: input, shape index: {}]   ;;  %s1457_s2 = inlined_call_operand.vmem [shape: f32[16,128], index: 2, kind: input, shape index: {}]   ;;  %s1458_s3 = inlined_call_operand.vmem [shape: f32[1,128], index: 3, kind: input, shape index: {}]   ;;  %s1459_s4 = inlined_call_operand.hbm [shape: f32[256,128], index: 4, kind: output, shape index: {0}]   ;;  %s1460_s5 = inlined_call_operand.hbm [shape: bf16[256,128], index: 5, kind: output, shape index: {1}]  }
   0x1   :  { %13 = vsyncpa [#allocation3 + $0x1], 0 }
   0x2   :  { %14 = vsyncpa [#allocation5], 0 }
   0x3   :  { %16 = vsyncpa [#allocation5 + $0x1], 0  ;;  %s1190_s18 = smov 0   ;;  %s1192_s19 = smov 0  }
   0x4   :  { %s1194_s20 = smov 0   ;;  %s1196_s21 = smov 0  }
   0x5 LB: > { %s1211_s22 = sadd.s32 4294967295, %s1151_s21   ;;  %s844_s23 = sadd.s32 4294967294, %s1151_s21   ;;  %s1151_s21 = sphi %s1196_s21, %s1466_s21   ;;  %s1147_s20 = sphi %s1194_s20, %s1465_s20   ;;  %s1143_s19 = sphi %s1192_s19, %s1464_s19   ;;  %s1139_s18 = sphi %s1190_s18, %s1463_s18  }
   0x6   : > { %s1215_s24 = sadd.s32 1, %s1151_s21   ;;  %s123_s25 = sadd.s32 1, %s1147_s20 }
   0x7   : > { %s120_s26 = ssub.s32 %s1151_s21, %s1215_s24  ;;  %p133_p0 = scmp.ne.s32.totalorder %s1147_s20, %s1143_s19 }
   0x8   : > { %p121_p1 = scmp.eq.s32.totalorder %s120_s26, 0  ;;  %p134_p2 = scmp.eq.s32.totalorder %s1211_s22, 1 }
   0x9   : > { %p139_p3 = scmp.ne.s32.totalorder %s1143_s19, %s1139_s18  ;;  %p140_p4 = scmp.eq.s32.totalorder %s844_s23, 1 }
   0xa   : > { %s1226_s27 = scalar_select %p121_p1, %s1147_s20, %s123_s25  }
   0xb   : > { %p1228_p5 = por %p134_p2, %p133_p0  ;;  %p1232_p6 = por %p140_p4, %p139_p3 }
   0xc   : > { %p847_p7 = scmp.ge.s32.totalorder %s1151_s21, 1  ;;  %p208_p8 = scmp.lt.s32.totalorder %s1151_s21, 3 }
   0xe   : > { %p209_p9 = pnand %p847_p7, %p208_p8 }
   0xf   : > { %s850_s9 = sshll.u32 (!%p209_p9), %s1211_s22, 4  ;;  %s1314_s17 = sand.u32 (!%p209_p9), 1, %s1143_s19  }
  0x10   : > { %212 = sbr.rel (%p209_p9) target bundleno = 278 (0x116), region = 36  ;;  %p247_p10 = scmp.lt.s32.totalorder (!%p209_p9), %s850_s9, 31 }
  0x11   : > { %s848_s26 = sshll.u32 (!%p209_p9), %s1314_s17, 7  ;;  %s849_s30 = sshll.u32 (!%p209_p9), %s1314_s17, 6 }
  0x12   : > { %s1329_s6 = scalar_lea.vmem (!%p209_p9), [#allocation2], %s848_s26  ;;  %s1341_s7 = scalar_lea.vmem (!%p209_p9), [#allocation4], %s849_s30 }
  0x13   : > { %s911_s8 = sshll.u32 (!%p209_p9), %s1211_s22, 11  ;;  %s738_s14 = sshll.u32 (!%p209_p9), %s1341_s7, 4  ;;  %s1386_s14 = int_to_ptr.vmem [resolvable:$true] %s738_s14 }
  0x14   : > { %s1367_s12 = scalar_lea.hbm (!%p209_p9), %s1459_s4, %s911_s8  ;;  %s704_s23 = scalar_lea.sflag (!%p209_p9), [#allocation3], %s1314_s17 }
  0x15   : > { %v277_v0 = vld [vmem:[%s1457_s2 + $0x8] sm:$0xff]  ;;  %v276_v1 = vld [vmem:[%s1457_s2] sm:$0xff]  ;;  %s1468_s9 = smov (!%p247_p10, %s850_s9), 31  ;;  %vm285_vm0 = vcmask 130048   ;;  %v1153_v2 = vmov 0   ;;  %s1154_s26 = smov [#allocation2]  }
  0x16   : > { %978 = vmatprep.subr.mxu0 %v277_v0  ;;  %1006 = vmatprep.subr.mxu1 %v277_v0  ;;  %s851_s10 = sshll.u32 %s1468_s9, 3  ;;  %v1319_v43 = vld [vmem:[%s1458_s3] ss:$0 sm:$0xff]  ;;  %s722_s9 = sshll.u32 %s1329_s6, 4  ;;  %s1374_s9 = int_to_ptr.vmem [resolvable:$true] %s722_s9 }
  0x17   : > { %979 = vmatpush3.msra.mxu0 %v277_v0  ;;  %1008 = vmatpush3.msra.mxu1 %v277_v0  ;;  %s1248_s13 = scalar_lea.vmem %s1455_s0, %s851_s10  ;;  %s1263_s16 = scalar_lea.vmem %s1456_s1, %s851_s10 }
  0x18   : > { %980 = vmatprep.subr.mxu0 %v276_v1  ;;  %1007 = vmatprep.subr.mxu1 %v276_v1  ;;  %v260_v3 = vld [vmem:[%s1248_s13] sm:$0xff]  ;;  %v261_v5 = vld [vmem:[%s1248_s13 + $0x8] sm:$0xff]  ;;  %v262_v7 = vld [vmem:[%s1248_s13 + $0x10] sm:$0xff]  ;;  %s1061_s25 = scalar_lea.vmem %s1374_s9, 2048  ;;  %s1065_s30 = sshll.u32 %s1154_s26, 4  ;;  %s1066_s30 = int_to_ptr.vmem [resolvable:$false] %s1065_s30 }
  0x19   : > { %981 = vmatpush3.msra.mxu0 %v276_v1  ;;  %1009 = vmatpush3.msra.mxu1 %v276_v1  ;;  %v268_v4 = vld [vmem:[%s1248_s13 + $0x40] sm:$0xff]  ;;  %v269_v6 = vld [vmem:[%s1248_s13 + $0x48] sm:$0xff]  ;;  %v270_v8 = vld [vmem:[%s1248_s13 + $0x50] sm:$0xff]  ;;  %p1062_p11 = scmp.ne.s32.totalorder %s1374_s9, %s1061_s25  ;;  %s1067_s8 = scalar_lea.vmem %s1066_s30, 4096 }
  0x1a   : > { %1060 = vset.pattern.permute.xlu1 %v1153_v2  ;;  %1059 = vset.pattern.permute.xlu0 %v1153_v2  ;;  %v263_v9 = vld [vmem:[%s1248_s13 + $0x18] sm:$0xff]  ;;  %v264_v11 = vld [vmem:[%s1248_s13 + $0x20] sm:$0xff]  ;;  %v497_v13 = vld [vmem:[%s1263_s16 + $0x10] sm:$0xff]  ;;  %p1068_p0 = scmp.lt.s32.totalorder %s1374_s9, %s1066_s30  ;;  %p1069_p1 = scmp.lt.s32.totalorder %s1067_s8, %s1061_s25 }
  0x1b   : > { %982 = vmatprep.mubr.msk.f32.mxu0 %vm285_vm0, %v260_v3  ;;  %994 = vmatprep.mubr.msk.f32.mxu1 %vm285_vm0, %v268_v4  ;;  %v271_v10 = vld [vmem:[%s1248_s13 + $0x58] sm:$0xff]  ;;  %v272_v12 = vld [vmem:[%s1248_s13 + $0x60] sm:$0xff]  ;;  %v265_v15 = vld [vmem:[%s1248_s13 + $0x28] sm:$0xff]  ;;  %p1063_p12 = pnand %p1062_p11, %p1228_p5 }
  0x1c   : > { %983 = vmatmul.mubr.msk.f32.vlgmr.msra.gmra.mxu0 %vm285_vm0, %v261_v5  ;;  %995 = vmatmul.mubr.msk.f32.vlgmr.msra.gmra.mxu1 %vm285_vm0, %v269_v6  ;;  %v495_v14 = vld [vmem:[%s1263_s16] sm:$0xff]  ;;  %v273_v16 = vld [vmem:[%s1248_s13 + $0x68] sm:$0xff]  ;;  %v266_v17 = vld [vmem:[%s1248_s13 + $0x30] sm:$0xff]  ;;  %p1070_p2 = por %p1069_p1, %p1068_p0 }
  0x1d   : > { %985 = vmatprep.mubr.msk.f32.mxu0 %vm285_vm0, %v262_v7  ;;  %997 = vmatprep.mubr.msk.f32.mxu1 %vm285_vm0, %v270_v8  ;;  %v274_v18 = vld [vmem:[%s1248_s13 + $0x70] sm:$0xff]  ;;  %v498_v19 = vld [vmem:[%s1263_s16 + $0x18] sm:$0xff]  ;;  %v496_v20 = vld [vmem:[%s1263_s16 + $0x8] sm:$0xff]  ;;  %p1064_p13 = pneg %p1063_p12 }
  0x1e   : > { %523 = vperm.xlu1 %1060, %v497_v13   ;;  %513 = vperm.xlu0 %1059, %v495_v14   ;;  %v267_v21 = vld [vmem:[%s1248_s13 + $0x38] sm:$0xff]  ;;  %v500_v23 = vld [vmem:[%s1263_s16 + $0x28] sm:$0xff]  ;;  %v499_v24 = vld [vmem:[%s1263_s16 + $0x20] sm:$0xff] }
  0x1f   : > { %v275_v22 = vld [vmem:[%s1248_s13 + $0x78] sm:$0xff]  ;;  %v501_v26 = vld [vmem:[%s1263_s16 + $0x30] sm:$0xff]  ;;  %v504_v27 = vld [vmem:[%s1263_s16 + $0x48] sm:$0xff]  ;;  %s912_s13 = sshll.u32 %s1211_s22, 10  ;;  %p1071_p3 = pnand %p1070_p2, %p1064_p13 }
  0x20   : > { %986 = vmatmul.mubr.msk.f32.gmra.mxu0 %vm285_vm0, %v263_v9  ;;  %998 = vmatmul.mubr.msk.f32.gmra.mxu1 %vm285_vm0, %v271_v10  ;;  %v502_v25 = vld [vmem:[%s1263_s16 + $0x38] sm:$0xff]  ;;  %v503_v28 = vld [vmem:[%s1263_s16 + $0x40] sm:$0xff]  ;;  %v505_v30 = vld [vmem:[%s1263_s16 + $0x50] sm:$0xff] }
  0x21   : > { %988 = vmatprep.mubr.msk.f32.mxu0 %vm285_vm0, %v264_v11  ;;  %1000 = vmatprep.mubr.msk.f32.mxu1 %vm285_vm0, %v272_v12  ;;  %v506_v29 = vld [vmem:[%s1263_s16 + $0x58] sm:$0xff]  ;;  %v508_v31 = vld [vmem:[%s1263_s16 + $0x68] sm:$0xff]  ;;  %v507_v32 = vld [vmem:[%s1263_s16 + $0x60] sm:$0xff] }
  0x22   : > { %528 = vperm.xlu1 %1060, %v498_v19   ;;  %518 = vperm.xlu0 %1059, %v496_v20   ;;  %v510_v33 = vld [vmem:[%s1263_s16 + $0x78] sm:$0xff]  ;;  %v509_v34 = vld [vmem:[%s1263_s16 + $0x70] sm:$0xff]  ;;  %s1384_s16 = scalar_lea.hbm %s1460_s5, %s912_s13 }
  0x24   : > { %989 = vmatmul.mubr.msk.f32.gmra.mxu0 %vm285_vm0, %v265_v15  ;;  %1001 = vmatmul.mubr.msk.f32.gmra.mxu1 %vm285_vm0, %v273_v16 }
  0x25   : > { %991 = vmatprep.mubr.msk.f32.mxu0 %vm285_vm0, %v266_v17  ;;  %1003 = vmatprep.mubr.msk.f32.mxu1 %vm285_vm0, %v274_v18 }
  0x26   : > { %538 = vperm.xlu1 %1060, %v500_v23   ;;  %533 = vperm.xlu0 %1059, %v499_v24  }
  0x28   : > { %992 = vmatmul.mubr.msk.f32.gmra.mxu0 %vm285_vm0, %v267_v21  ;;  %1004 = vmatmul.mubr.msk.f32.gmra.mxu1 %vm285_vm0, %v275_v22 }
  0x2a   : > { %548 = vperm.xlu1 %1060, %v502_v25   ;;  %543 = vperm.xlu0 %1059, %v501_v26  }
  0x2e   : > { %558 = vperm.xlu1 %1060, %v504_v27   ;;  %553 = vperm.xlu0 %1059, %v503_v28  }
  0x32   : > { %568 = vperm.xlu1 %1060, %v506_v29   ;;  %563 = vperm.xlu0 %1059, %v505_v30  }
  0x36   : > { %578 = vperm.xlu1 %1060, %v508_v31   ;;  %573 = vperm.xlu0 %1059, %v507_v32  }
  0x3a   : > { %588 = vperm.xlu1 %1060, %v510_v33   ;;  %583 = vperm.xlu0 %1059, %v509_v34  }
  0x99   : > { %v1303_v35 = vpop.permute.xlu1 %523  ;;  %v514_v36 = vpop.permute.xlu0 %513 }
  0x9d   : > { %v529_v37 = vpop.permute.xlu1 %528  ;;  %v519_v38 = vpop.permute.xlu0 %518 }
  0xa1   : > { %v1305_v39 = vpop.permute.xlu1 %538  ;;  %v1307_v40 = vpop.permute.xlu0 %533 }
  0xa5   : > { %v1309_v41 = vpop.permute.xlu1 %548  ;;  %v1311_v42 = vpop.permute.xlu0 %543 }
  0xa9   : > { %v559_v44 = vpop.permute.xlu1 %558  ;;  %v554_v45 = vpop.permute.xlu0 %553 }
  0xad   : > { %v569_v58 = vpop.permute.xlu1 %568  ;;  %v564_v59 = vpop.permute.xlu0 %563 }
  0xb1   : > { %v579_v22 = vpop.permute.xlu1 %578  ;;  %v574_v23 = vpop.permute.xlu0 %573 }
  0xdc   : > { %v984_v46 = vpop.f32.mrf.mxu0  ;;  %v996_v47 = vpop.f32.mrf.mxu1 }
  0xdd   : > { %v406_v48 = vadd.f32 %v984_v46, %v1319_v43  ;;  %v446_v49 = vadd.f32 %v996_v47, %v1319_v43 }
  0xde   : > { %v400_v50 = vpop.f32.mrf.mxu0  ;;  %v440_v51 = vpop.f32.mrf.mxu1 }
  0xdf   : > { %v480_v52 = vmax.f32 %v406_v48, 0.0  ;;  %v488_v53 = vmax.f32 %v446_v49, 0.0  ;;  %v401_v54 = vadd.f32 %v1319_v43, %v400_v50  ;;  %v441_v55 = vadd.f32 %v1319_v43, %v440_v51 }
  0xe0   : > { %v987_v56 = vpop.f32.mrf.mxu0  ;;  %v999_v57 = vpop.f32.mrf.mxu1 }
  0xe1   : > { %v592_v60 = vmul.f32 %v519_v38, %v480_v52  ;;  %v600_v61 = vmul.f32 %v559_v44, %v488_v53  ;;  %v479_v62 = vmax.f32 %v401_v54, 0.0  ;;  %v487_v63 = vmax.f32 %v441_v55, 0.0  ;;  %v584_v55 = vpop.permute.xlu0 %583 }
  0xe2   : > { %v416_v0 = vadd.f32 %v987_v56, %v1319_v43  ;;  %v456_v1 = vadd.f32 %v999_v57, %v1319_v43  ;;  %v410_v2 = vpop.f32.mrf.mxu0  ;;  %v450_v3 = vpop.f32.mrf.mxu1 }
  0xe3   : > { %608 = vst [vmem:[%s1329_s6 + $0x8] sm:$0xff] %v592_v60  ;;  %616 = vst [vmem:[%s1329_s6 + $0x48] sm:$0xff] %v600_v61  ;;  %v591_v4 = vmul.f32 %v514_v36, %v479_v62  ;;  %v599_v5 = vmul.f32 %v554_v45, %v487_v63  ;;  %v411_v6 = vadd.f32 %v1319_v43, %v410_v2 }
  0xe4   : > { %v451_v7 = vadd.f32 %v1319_v43, %v450_v3  ;;  %v482_v8 = vmax.f32 %v416_v0, 0.0  ;;  %v490_v9 = vmax.f32 %v456_v1, 0.0  ;;  %v990_v10 = vpop.f32.mrf.mxu0  ;;  %v1002_v11 = vpop.f32.mrf.mxu1 }
  0xe5   : > { %607 = vst [vmem:[%s1329_s6] sm:$0xff] %v591_v4  ;;  %v916_v12 = vpack.c.bf16 %v592_v60, %v591_v4  ;;  %615 = vst [vmem:[%s1329_s6 + $0x40] sm:$0xff] %v599_v5  ;;  %v936_v13 = vpack.c.bf16 %v600_v61, %v599_v5  ;;  %v481_v14 = vmax.f32 %v411_v6, 0.0  ;;  %v426_v18 = vadd.f32 %v990_v10, %v1319_v43 }
  0xe6   : > { %v489_v15 = vmax.f32 %v451_v7, 0.0  ;;  %v594_v16 = vmul.f32 %v529_v37, %v482_v8  ;;  %v602_v17 = vmul.f32 %v569_v58, %v490_v9  ;;  %v466_v19 = vadd.f32 %v1002_v11, %v1319_v43  ;;  %v420_v20 = vpop.f32.mrf.mxu0  ;;  %v460_v21 = vpop.f32.mrf.mxu1 }
  0xe7   : > { %917 = vst [vmem:[%s1341_s7] sm:$0xff] %v916_v12   ;;  %956 = vst [vmem:[%s1341_s7 + $0x20] sm:$0xff] %v936_v13   ;;  %v593_v24 = vmul.f32 %v1303_v35, %v481_v14  ;;  %v421_v26 = vadd.f32 %v1319_v43, %v420_v20  ;;  %v461_v27 = vadd.f32 %v1319_v43, %v460_v21  ;;  %v484_v28 = vmax.f32 %v426_v18, 0.0 }
  0xe8   : > { %v601_v25 = vmul.f32 %v564_v59, %v489_v15  ;;  %610 = vst [vmem:[%s1329_s6 + $0x18] sm:$0xff] %v594_v16  ;;  %618 = vst [vmem:[%s1329_s6 + $0x58] sm:$0xff] %v602_v17  ;;  %v492_v29 = vmax.f32 %v466_v19, 0.0  ;;  %v993_v30 = vpop.f32.mrf.mxu0  ;;  %v1005_v31 = vpop.f32.mrf.mxu1 }
  0xe9   : > { %609 = vst [vmem:[%s1329_s6 + $0x10] sm:$0xff] %v593_v24  ;;  %v921_v32 = vpack.c.bf16 %v594_v16, %v593_v24  ;;  %v483_v34 = vmax.f32 %v421_v26, 0.0  ;;  %v491_v35 = vmax.f32 %v461_v27, 0.0  ;;  %v596_v36 = vmul.f32 %v1305_v39, %v484_v28 }
  0xea   : > { %617 = vst [vmem:[%s1329_s6 + $0x50] sm:$0xff] %v601_v25  ;;  %v941_v33 = vpack.c.bf16 %v602_v17, %v601_v25  ;;  %v604_v37 = vmul.f32 %v579_v22, %v492_v29  ;;  %v436_v38 = vadd.f32 %v993_v30, %v1319_v43  ;;  %v476_v44 = vadd.f32 %v1005_v31, %v1319_v43  ;;  %v430_v45 = vpop.f32.mrf.mxu0  ;;  %v470_v46 = vpop.f32.mrf.mxu1 }
  0xeb   : > { %953 = vst [vmem:[%s1341_s7 + $0x8] sm:$0xff] %v921_v32   ;;  %v595_v47 = vmul.f32 %v1307_v40, %v483_v34  ;;  %v603_v48 = vmul.f32 %v574_v23, %v491_v35  ;;  %v431_v49 = vadd.f32 %v1319_v43, %v430_v45  ;;  %v471_v39 = vadd.f32 %v1319_v43, %v470_v46  ;;  %v589_v40 = vpop.permute.xlu1 %588 }
  0xec   : > { %957 = vst [vmem:[%s1341_s7 + $0x28] sm:$0xff] %v941_v33   ;;  %612 = vst [vmem:[%s1329_s6 + $0x28] sm:$0xff] %v596_v36  ;;  %v486_v50 = vmax.f32 %v436_v38, 0.0  ;;  %v494_v51 = vmax.f32 %v476_v44, 0.0 }
  0xed   : > { %620 = vst [vmem:[%s1329_s6 + $0x68] sm:$0xff] %v604_v37  ;;  %611 = vst [vmem:[%s1329_s6 + $0x20] sm:$0xff] %v595_v47  ;;  %v926_v52 = vpack.c.bf16 %v596_v36, %v595_v47  ;;  %v946_v53 = vpack.c.bf16 %v604_v37, %v603_v48  ;;  %v485_v43 = vmax.f32 %v431_v49, 0.0  ;;  %v493_v54 = vmax.f32 %v471_v39, 0.0 }
  0xee   : > { %619 = vst [vmem:[%s1329_s6 + $0x60] sm:$0xff] %v603_v48  ;;  %v598_v56 = vmul.f32 %v1309_v41, %v486_v50  ;;  %v606_v57 = vmul.f32 %v589_v40, %v494_v51 }
  0xef   : > { %954 = vst [vmem:[%s1341_s7 + $0x10] sm:$0xff] %v926_v52   ;;  %958 = vst [vmem:[%s1341_s7 + $0x30] sm:$0xff] %v946_v53   ;;  %v597_v58 = vmul.f32 %v1311_v42, %v485_v43  ;;  %v605_v59 = vmul.f32 %v584_v55, %v493_v54 }
  0xf0   : > { %614 = vst [vmem:[%s1329_s6 + $0x38] sm:$0xff] %v598_v56  ;;  %622 = vst [vmem:[%s1329_s6 + $0x78] sm:$0xff] %v606_v57 }
  0xf1   : > { %613 = vst [vmem:[%s1329_s6 + $0x30] sm:$0xff] %v597_v58  ;;  %v931_v41 = vpack.c.bf16 %v598_v56, %v597_v58  ;;  %621 = vst [vmem:[%s1329_s6 + $0x70] sm:$0xff] %v605_v59  ;;  %v951_v60 = vpack.c.bf16 %v606_v57, %v605_v59 }
  0xf2   : > { %1074 = shalt.err (!%p1071_p3)
}
  0xf3   : > { %s1075_s6 = scalar_lea.hbm %s1367_s12, 2048  ;;  %s1079_s13 = scalar_lea.hbm %s1459_s4, 4096 }
  0xf4   : > { %p1076_p4 = scmp.ne.s32.totalorder %s1367_s12, %s1075_s6  ;;  %p1080_p9 = scmp.lt.s32.totalorder %s1367_s12, %s1459_s4 }
  0xf5   : > { %p1081_p10 = scmp.lt.s32.totalorder %s1079_s13, %s1075_s6 }
  0xf6   : > { %p1077_p7 = pnand %p1076_p4, %p1228_p5 }
  0xf7   : > { %p1082_p11 = por %p1081_p10, %p1080_p9 }
  0xf8   : > { %p1078_p8 = pneg %p1077_p7 }
  0xfa   : > { %p1083_p12 = pnand %p1082_p11, %p1078_p8 }
  0xfc   : > { %1086 = shalt.err (!%p1083_p12)
}
  0xfd   : > { %s1155_s25 = smov 128   ;;  %s1156_s26 = smov 8   ;;  %955 = vst [vmem:[%s1341_s7 + $0x18] sm:$0xff] %v931_v41   ;;  %959 = vst [vmem:[%s1341_s7 + $0x38] sm:$0xff] %v951_v60  }
  0xfe   : > { %1010 = dma.vmem_to_hbm [thread:$0]  (%p1228_p5), %s1374_s9, 2048, %s1367_s12, %s704_s23, %s1155_s25, %s1155_s25, %s1156_s26  }
  0xff   : > { %s709_s30 = scalar_lea.sflag [#allocation5], %s1314_s17  ;;  %s1087_s8 = scalar_lea.vmem %s1386_s14, 1024 }
 0x100   : > { %p1088_p13 = scmp.ne.s32.totalorder %s1386_s14, %s1087_s8  ;;  %s1157_s6 = smov [#allocation4]  }
 0x101   : > { %s1091_s10 = sshll.u32 %s1157_s6, 4  ;;  %s1092_s10 = int_to_ptr.vmem [resolvable:$false] %s1091_s10 }
 0x102   : > { %p1089_p0 = pnand %p1088_p13, %p1228_p5  ;;  %s1093_s11 = scalar_lea.vmem %s1092_s10, 2048 }
 0x103   : > { %p1094_p2 = scmp.lt.s32.totalorder %s1386_s14, %s1092_s10  ;;  %p1095_p3 = scmp.lt.s32.totalorder %s1093_s11, %s1087_s8 }
 0x104   : > { %p1090_p1 = pneg %p1089_p0 }
 0x105   : > { %p1096_p4 = por %p1095_p3, %p1094_p2 }
 0x107   : > { %p1097_p7 = pnand %p1096_p4, %p1090_p1 }
 0x109   : > { %1100 = shalt.err (!%p1097_p7)
}
 0x10a   : > { %s1101_s7 = scalar_lea.hbm %s1384_s16, 1024  ;;  %s1105_s23 = scalar_lea.hbm %s1460_s5, 2048 }
 0x10b   : > { %p1102_p8 = scmp.ne.s32.totalorder %s1384_s16, %s1101_s7  ;;  %p1106_p11 = scmp.lt.s32.totalorder %s1384_s16, %s1460_s5 }
 0x10c   : > { %p1107_p12 = scmp.lt.s32.totalorder %s1105_s23, %s1101_s7 }
 0x10d   : > { %p1103_p9 = pnand %p1102_p8, %p1228_p5 }
 0x10e   : > { %p1108_p13 = por %p1107_p12, %p1106_p11 }
 0x10f   : > { %p1104_p10 = pneg %p1103_p9 }
 0x111   : > { %p1109_p0 = pnand %p1108_p13, %p1104_p10 }
 0x113   : > { %1112 = shalt.err (!%p1109_p0)
}
 0x114   : > { %s1158_s15 = smov 64   ;;  %s1159_s25 = smov 4  }
 0x115   : > { %1011 = dma.vmem_to_hbm [thread:$0]  (%p1228_p5), %s1386_s14, 1024, %s1384_s16, %s709_s30, %s1158_s15, %s1158_s15, %s1159_s25  }
 0x116 PF: > { %p1021_p1 = scmp.ge.s32.totalorder %s1151_s21, 2  ;;  %s753_s26 = sand.u32 1, %s1139_s18  }
 0x117   : > { %s754_s8 = scalar_lea.sflag [#allocation3], %s753_s26 }
 0x118   : > { %p1015_p2 = pnand %p1021_p1, %p1232_p6 }
 0x11a   : > { %p1016_p3 = pneg %p1015_p2 }
 0x11c   : > { %1130 = dma.done.wait (%p1016_p3), %s754_s8, 2048  }
 0x11d   : > { %1132 = vsyncadd (%p1016_p3), %s754_s8, 4294965248  ;;  %s763_s6 = scalar_lea.sflag [#allocation5], %s753_s26 }
 0x11e   : > { %1134 = dma.done.wait (%p1016_p3), %s763_s6, 1024  }
 0x11f   : > { %1136 = vsyncadd (%p1016_p3), %s763_s6, 4294966272  ;;  %p19_p5 = scmp.ge.s32.totalorder %s1215_s24, 4   ;;  %s1463_s18 = smov %s1143_s19 }
 0x120   : > { %s1464_s19 = smov %s1147_s20  ;;  %s1465_s20 = smov %s1226_s27 }
 0x121   : > { %s1466_s21 = smov %s1215_s24  ;;  %21 = sbr.rel (!%p19_p5) target bundleno = 5 (0x5), region = 91 }
 0x126   :  { %768 = vsyncpa [#allocation3], 1 }
 0x127   :  { %770 = vsyncpa [#allocation3 + $0x1], 1 }
 0x128   :  { %771 = vsyncpa [#allocation5], 1 }
 0x129   :  { %773 = vsyncpa [#allocation5 + $0x1], 1 }

</bundles_post_ra>
